<compile_context>
chip_gen: v6e
topology: v6e:2x2x1
jax: 0.10.0
libtpu: 0.0.40
codegen_flags: <defaults>
</compile_context>

<pallas_src>
import functools

import jax
import jax.numpy as jnp
from jax.experimental import pallas as pl
from jax.experimental.pallas import tpu as pltpu


def _round_up(n, m):
    return ((n + m - 1) // m) * m


def _fused_mlp_kernel(*refs, n_layers):
    """One batch tile: Linear(+ReLU) x (n_layers-1) -> Linear -> softplus."""
    x_ref = refs[0]
    w_refs = refs[1:1 + n_layers]
    b_refs = refs[1 + n_layers:1 + 2 * n_layers]
    o_ref = refs[1 + 2 * n_layers]

    # Layer 0 in f32: long (input_dim) contraction; kernel is HBM-bound so the
    # extra MXU passes are free and accuracy matches the f32 reference closely.
    y = jnp.dot(x_ref[...], w_refs[0][...], preferred_element_type=jnp.float32)
    y = y + b_refs[0][...]                       # (1, Dout) bias broadcasts, f32
    for li in range(1, n_layers):
        h = jnp.maximum(y, 0.0).astype(jnp.bfloat16)     # ReLU, bf16 MXU input
        y = jnp.dot(h, w_refs[li][...], preferred_element_type=jnp.float32)
        y = y + b_refs[li][...]
    # torch.nn.functional.softplus(beta=1, threshold=20):
    #   y if y > 20 else log1p(exp(y))
    y = jnp.where(y > 20.0, y, jnp.log1p(jnp.exp(jnp.minimum(y, 20.0))))
    o_ref[...] = y.astype(o_ref.dtype)


def prepare_mlp_dirichlet_params(params):
    """One-time (hoisted) pad/cast of weights. Zero padding is exact: padded x
    columns are 0, padded W rows/cols are 0, padded bias entries are 0."""
    dims = [params[0][0].shape[0]] + [w.shape[1] for (w, _) in params]
    dims_p = [_round_up(d, 128) for d in dims]
    ws, bs = [], []
    for li, (w, b) in enumerate(params):
        wp = jnp.pad(w.astype(jnp.float32),
                     ((0, dims_p[li] - dims[li]),
                      (0, dims_p[li + 1] - dims[li + 1])))
        # Layer-0 weight stays f32 (accuracy over K=input_dim), rest bf16.
        ws.append(wp if li == 0 else wp.astype(jnp.bfloat16))
        bp = jnp.pad(b.astype(jnp.float32).reshape(1, -1),
                     ((0, 0), (0, dims_p[li + 1] - dims[li + 1])))
        bs.append(bp)
    return dict(ws=ws, bs=bs, dims=tuple(dims), dims_p=tuple(dims_p))


def mlp_dirichlet_forward(x, prepared, input_dim, flatten_image=True,
                          batch_tile=1024):
    """Forward pass of MLP_dirichlet as one fused Pallas kernel.

    x: [B, C, H, W] (or [B, input_dim] if flatten_image=False), any float dtype
    prepared: output of prepare_mlp_dirichlet_params
    returns: dir_params [B, output_dim] f32 (softplus outputs, > 0)
    """
    ws, bs = prepared["ws"], prepared["bs"]
    dims, dims_p = prepared["dims"], prepared["dims_p"]
    n_layers = len(ws)
    output_dim = dims[-1]
    assert dims[0] == input_dim

    if flatten_image:
        x = x.reshape(-1, input_dim)
    x = x.astype(jnp.float32)
    B = x.shape[0]
    if dims_p[0] != dims[0]:  # only pad x when input_dim is not lane-aligned
        x = jnp.pad(x, ((0, 0), (0, dims_p[0] - dims[0])))

    # Batch tile: full B when tiny (block == full dim is legal); otherwise a
    # multiple of 16 chosen so the grid has >= 2 tiles (v7x megacore sharding),
    # capped at batch_tile. Edge tiles are masked by Pallas.
    if B <= 16:
        tb = B
    else:
        tb = min(batch_tile, _round_up(pl.cdiv(B, 2), 16))
    grid = (pl.cdiv(B, tb),)

    in_specs = [pl.BlockSpec((tb, dims_p[0]), lambda i: (i, 0))]
    for li in range(n_layers):  # constant weight blocks: single-buffered
        in_specs.append(pl.BlockSpec((dims_p[li], dims_p[li + 1]),
                                     lambda i: (0, 0),
                                     pipeline_mode=pl.Buffered(1)))
    for li in range(n_layers):  # constant bias blocks: single-buffered
        in_specs.append(pl.BlockSpec((1, dims_p[li + 1]),
                                     lambda i: (0, 0),
                                     pipeline_mode=pl.Buffered(1)))
    out_spec = pl.BlockSpec((tb, dims_p[-1]), lambda i: (i, 0))

    w_bytes = sum(int(w.size) * w.dtype.itemsize for w in ws)
    b_bytes = sum(int(b.size) * 4 for b in bs)
    x_tile_bytes = 2 * tb * dims_p[0] * 4       # double-buffered f32 x tile
    o_tile_bytes = 2 * tb * dims_p[-1] * 4      # double-buffered f32 out tile
    vmem_limit = int(min(max(2 * (x_tile_bytes + o_tile_bytes + w_bytes + b_bytes)
                             + (4 << 20), 16 << 20), 64 << 20))

    flops = 2 * B * sum(dims_p[i] * dims_p[i + 1] for i in range(n_layers))
    bytes_accessed = (B * dims_p[0] * 4 + w_bytes + b_bytes
                      + B * dims_p[-1] * 4)
    cost = pl.CostEstimate(flops=flops,
                           transcendentals=2 * B * dims_p[-1],
                           bytes_accessed=bytes_accessed)

    out_padded = pl.pallas_call(
        functools.partial(_fused_mlp_kernel, n_layers=n_layers),
        out_shape=jax.ShapeDtypeStruct((B, dims_p[-1]), jnp.float32),
        grid_spec=pltpu.PrefetchScalarGridSpec(
            num_scalar_prefetch=0,
            grid=grid,
            in_specs=in_specs,
            out_specs=out_spec,
        ),
        compiler_params=pltpu.CompilerParams(
            dimension_semantics=("parallel",),
            vmem_limit_bytes=vmem_limit),
        cost_estimate=cost,
    )(x, *ws, *bs)

    return out_padded[:, :output_dim]  # dir_params


def init_mlp_dirichlet_params(key, input_dim, width, depth, output_dim):
    """Deterministic init mimicking PyTorch nn.Linear defaults (U(+-1/sqrt(fan_in)))."""
    dims = [input_dim] + [width] * depth + [output_dim]
    params = []
    for i in range(len(dims) - 1):
        fan_in, fan_out = dims[i], dims[i + 1]
        key, kw, kb = jax.random.split(key, 3)
        bound = 1.0 / jnp.sqrt(jnp.float32(fan_in))
        w = jax.random.uniform(kw, (fan_in, fan_out), jnp.float32, -bound, bound)
        b = jax.random.uniform(kb, (fan_out,), jnp.float32, -bound, bound)
        params.append((w, b))
    return params


def _reference_forward(x, params, input_dim):
    """Pure-JAX f32 reference matching the PyTorch module."""
    x = x.reshape(-1, input_dim).astype(jnp.float32)
    n = len(params)
    for idx, (w, b) in enumerate(params):
        x = x @ w + b
        if idx < n - 1:
            x = jnp.maximum(x, 0.0)
        else:
            x = jnp.where(x > 20.0, x, jnp.log1p(jnp.exp(jnp.minimum(x, 20.0))))
    return x


if __name__ == "__main__":
    # Small, module-consistent shapes.
    B, C, H, W = 2, 4, 16, 16
    input_dim = C * H * W        # 1024 (flatten_image=True)
    width = 128
    depth = 2                    # 2 hidden Linear+ReLU layers, then output Linear
    output_dim = 8

    key = jax.random.PRNGKey(0)
    key, kx = jax.random.split(key)
    x = jax.random.normal(kx, (B, C, H, W), dtype=jnp.float32)

    params = init_mlp_dirichlet_params(key, input_dim, width, depth, output_dim)
    prepared = prepare_mlp_dirichlet_params(params)   # one-time pad/cast (hoisted)

    out = mlp_dirichlet_forward(x, prepared, input_dim, flatten_image=True)
    out = jax.block_until_ready(out)
    ref = _reference_forward(x, params, input_dim)
    assert out.shape == (B, output_dim)
    assert bool(jnp.all(out > 0.0))  # softplus output strictly positive
    assert jnp.allclose(out, ref, rtol=2e-2, atol=2e-2), (
        "max abs diff = %f" % float(jnp.max(jnp.abs(out - ref))))

    # Also exercise the multi-tile path (grid >= 2, masked edge tile).
    B2 = 40
    key, kx2 = jax.random.split(key)
    x2 = jax.random.normal(kx2, (B2, C, H, W), dtype=jnp.float32)
    out2 = jax.block_until_ready(
        mlp_dirichlet_forward(x2, prepared, input_dim, flatten_image=True))
    ref2 = _reference_forward(x2, params, input_dim)
    assert out2.shape == (B2, output_dim)
    assert bool(jnp.all(out2 > 0.0))
    assert jnp.allclose(out2, ref2, rtol=2e-2, atol=2e-2), (
        "max abs diff = %f" % float(jnp.max(jnp.abs(out2 - ref2))))

    print("KERNEL_OK")
</pallas_src>

<mosaic_0001>
module attributes {stable_mosaic.version = 11 : i64} {
  func.func @_fused_mlp_kernel(%arg0: i32, %arg1: memref<2x1024xf32, #tpu.memory_space<vmem>>, %arg2: memref<1024x128xf32, #tpu.memory_space<vmem>>, %arg3: memref<128x128xbf16, #tpu.memory_space<vmem>>, %arg4: memref<128x128xbf16, #tpu.memory_space<vmem>>, %arg5: memref<1x128xf32, #tpu.memory_space<vmem>>, %arg6: memref<1x128xf32, #tpu.memory_space<vmem>>, %arg7: memref<1x128xf32, #tpu.memory_space<vmem>>, %arg8: memref<2x128xf32, #tpu.memory_space<vmem>>) attributes {dimension_semantics = [#tpu.dimension_semantics<parallel>], iteration_bounds = array<i64: 1>, scalar_prefetch = 0 : i64, scratch_operands = 0 : i64, tpu.core_type = #tpu.core_type<tc>, window_params = [{transform_indices = @transform_0, window_bounds = array<i64: 2, 1024>}, {pipeline_mode = #tpu.pipeline_mode<synchronous>, transform_indices = @transform_1, window_bounds = array<i64: 1024, 128>}, {pipeline_mode = #tpu.pipeline_mode<synchronous>, transform_indices = @transform_2, window_bounds = array<i64: 128, 128>}, {pipeline_mode = #tpu.pipeline_mode<synchronous>, transform_indices = @transform_3, window_bounds = array<i64: 128, 128>}, {pipeline_mode = #tpu.pipeline_mode<synchronous>, transform_indices = @transform_4, window_bounds = array<i64: 1, 128>}, {pipeline_mode = #tpu.pipeline_mode<synchronous>, transform_indices = @transform_5, window_bounds = array<i64: 1, 128>}, {pipeline_mode = #tpu.pipeline_mode<synchronous>, transform_indices = @transform_6, window_bounds = array<i64: 1, 128>}, {transform_indices = @transform_7, window_bounds = array<i64: 2, 128>}]} {
    %c0 = arith.constant 0 : index
    %c0_0 = arith.constant 0 : index
    %0 = vector.load %arg1[%c0, %c0_0] : memref<2x1024xf32, #tpu.memory_space<vmem>>, vector<2x1024xf32>
    %c0_1 = arith.constant 0 : index
    %c0_2 = arith.constant 0 : index
    %1 = vector.load %arg2[%c0_1, %c0_2] : memref<1024x128xf32, #tpu.memory_space<vmem>>, vector<1024x128xf32>
    %cst = arith.constant dense<0.000000e+00> : vector<2x128xf32>
    %2 = tpu.matmul %0, %1, %cst {dimension_numbers = #tpu.dot_dimension_numbers<[1], [0], [0], [1], [0, 0, 1, 1], [], []>} : vector<2x1024xf32>, vector<1024x128xf32>, vector<2x128xf32> -> vector<2x128xf32>
    %c0_3 = arith.constant 0 : index
    %c0_4 = arith.constant 0 : index
    %3 = vector.load %arg5[%c0_3, %c0_4] : memref<1x128xf32, #tpu.memory_space<vmem>>, vector<1x128xf32>
    %4 = vector.broadcast %3 : vector<1x128xf32> to vector<2x128xf32>
    %5 = arith.addf %2, %4 : vector<2x128xf32>
    %cst_5 = arith.constant 0.000000e+00 : f32
    %6 = vector.broadcast %cst_5 : f32 to vector<2x128xf32>
    %7 = arith.maximumf %5, %6 : vector<2x128xf32>
    %8 = arith.truncf %7 : vector<2x128xf32> to vector<2x128xbf16>
    %c0_6 = arith.constant 0 : index
    %c0_7 = arith.constant 0 : index
    %9 = vector.load %arg3[%c0_6, %c0_7] : memref<128x128xbf16, #tpu.memory_space<vmem>>, vector<128x128xbf16>
    %cst_8 = arith.constant dense<0.000000e+00> : vector<2x128xf32>
    %10 = tpu.matmul %8, %9, %cst_8 {dimension_numbers = #tpu.dot_dimension_numbers<[1], [0], [0], [1], [0, 0, 1, 1], [], []>} : vector<2x128xbf16>, vector<128x128xbf16>, vector<2x128xf32> -> vector<2x128xf32>
    %c0_9 = arith.constant 0 : index
    %c0_10 = arith.constant 0 : index
    %11 = vector.load %arg6[%c0_9, %c0_10] : memref<1x128xf32, #tpu.memory_space<vmem>>, vector<1x128xf32>
    %12 = vector.broadcast %11 : vector<1x128xf32> to vector<2x128xf32>
    %13 = arith.addf %10, %12 : vector<2x128xf32>
    %cst_11 = arith.constant 0.000000e+00 : f32
    %14 = vector.broadcast %cst_11 : f32 to vector<2x128xf32>
    %15 = arith.maximumf %13, %14 : vector<2x128xf32>
    %16 = arith.truncf %15 : vector<2x128xf32> to vector<2x128xbf16>
    %c0_12 = arith.constant 0 : index
    %c0_13 = arith.constant 0 : index
    %17 = vector.load %arg4[%c0_12, %c0_13] : memref<128x128xbf16, #tpu.memory_space<vmem>>, vector<128x128xbf16>
    %cst_14 = arith.constant dense<0.000000e+00> : vector<2x128xf32>
    %18 = tpu.matmul %16, %17, %cst_14 {dimension_numbers = #tpu.dot_dimension_numbers<[1], [0], [0], [1], [0, 0, 1, 1], [], []>} : vector<2x128xbf16>, vector<128x128xbf16>, vector<2x128xf32> -> vector<2x128xf32>
    %c0_15 = arith.constant 0 : index
    %c0_16 = arith.constant 0 : index
    %19 = vector.load %arg7[%c0_15, %c0_16] : memref<1x128xf32, #tpu.memory_space<vmem>>, vector<1x128xf32>
    %20 = vector.broadcast %19 : vector<1x128xf32> to vector<2x128xf32>
    %21 = arith.addf %18, %20 : vector<2x128xf32>
    %cst_17 = arith.constant 2.000000e+01 : f32
    %22 = vector.broadcast %cst_17 : f32 to vector<2x128xf32>
    %23 = arith.cmpf ogt, %21, %22 : vector<2x128xf32>
    %cst_18 = arith.constant 2.000000e+01 : f32
    %24 = vector.broadcast %cst_18 : f32 to vector<2x128xf32>
    %25 = arith.minimumf %21, %24 : vector<2x128xf32>
    %26 = math.exp %25 : vector<2x128xf32>
    %27 = math.log1p %26 : vector<2x128xf32>
    %28 = arith.select %23, %21, %27 : vector<2x128xi1>, vector<2x128xf32>
    %c0_19 = arith.constant 0 : index
    %c0_20 = arith.constant 0 : index
    %29 = vector.load %arg8[%c0_19, %c0_20] : memref<2x128xf32, #tpu.memory_space<vmem>>, vector<2x128xf32>
    tpu.vector_store %arg8[%c0_19, %c0_20], %28 {strides = array<i32>} : memref<2x128xf32, #tpu.memory_space<vmem>>, vector<2x128xf32>,
    return
  }
  func.func @transform_0(%arg0: i32) -> (i32, i32) {
    %c0_i32 = arith.constant 0 : i32
    %c0_i32_0 = arith.constant 0 : i32
    return %arg0, %c0_i32 : i32, i32
  }
  func.func @transform_1(%arg0: i32) -> (i32, i32) {
    %c0_i32 = arith.constant 0 : i32
    %c0_i32_0 = arith.constant 0 : i32
    %c0_i32_1 = arith.constant 0 : i32
    return %c0_i32, %c0_i32_0 : i32, i32
  }
  func.func @transform_2(%arg0: i32) -> (i32, i32) {
    %c0_i32 = arith.constant 0 : i32
    %c0_i32_0 = arith.constant 0 : i32
    %c0_i32_1 = arith.constant 0 : i32
    return %c0_i32, %c0_i32_0 : i32, i32
  }
  func.func @transform_3(%arg0: i32) -> (i32, i32) {
    %c0_i32 = arith.constant 0 : i32
    %c0_i32_0 = arith.constant 0 : i32
    %c0_i32_1 = arith.constant 0 : i32
    return %c0_i32, %c0_i32_0 : i32, i32
  }
  func.func @transform_4(%arg0: i32) -> (i32, i32) {
    %c0_i32 = arith.constant 0 : i32
    %c0_i32_0 = arith.constant 0 : i32
    %c0_i32_1 = arith.constant 0 : i32
    return %c0_i32, %c0_i32_0 : i32, i32
  }
  func.func @transform_5(%arg0: i32) -> (i32, i32) {
    %c0_i32 = arith.constant 0 : i32
    %c0_i32_0 = arith.constant 0 : i32
    %c0_i32_1 = arith.constant 0 : i32
    return %c0_i32, %c0_i32_0 : i32, i32
  }
  func.func @transform_6(%arg0: i32) -> (i32, i32) {
    %c0_i32 = arith.constant 0 : i32
    %c0_i32_0 = arith.constant 0 : i32
    %c0_i32_1 = arith.constant 0 : i32
    return %c0_i32, %c0_i32_0 : i32, i32
  }
  func.func @transform_7(%arg0: i32) -> (i32, i32) {
    %c0_i32 = arith.constant 0 : i32
    %c0_i32_0 = arith.constant 0 : i32
    return %arg0, %c0_i32 : i32, i32
  }
}

</mosaic_0001>

<bundles_post_ra>
// kernel: tpu_custom_call.1
= control target key start
LH: loop header
LB: loop body
LE: loop exit
PB: predicated region body
PF: predicated region fallthrough
CT: control target
= control target key end

     0   :  { %12 = vsyncpa [#allocation3], 0  ;;  %s1259_s0 = inlined_call_operand.hbm [shape: f32[2,1024], index: 0, kind: input, shape index: {}]   ;;  %s1260_s1 = inlined_call_operand.hbm [shape: f32[1024,128], index: 1, kind: input, shape index: {}]   ;;  %s1261_s2 = inlined_call_operand.hbm [shape: bf16[128,128], index: 2, kind: input, shape index: {}]   ;;  %s1262_s3 = inlined_call_operand.hbm [shape: bf16[128,128], index: 3, kind: input, shape index: {}]   ;;  %s1263_s4 = inlined_call_operand.vmem [shape: f32[1,128], index: 4, kind: input, shape index: {}]   ;;  %s1264_s5 = inlined_call_operand.vmem [shape: f32[1,128], index: 5, kind: input, shape index: {}]   ;;  %s1265_s6 = inlined_call_operand.vmem [shape: f32[1,128], index: 6, kind: input, shape index: {}]   ;;  %s1266_s7 = inlined_call_operand.hbm [shape: f32[2,128], index: 7, kind: output, shape index: {}]  }
   0x1   :  { %13 = vsyncpa [#allocation6], 0 }
   0x2   :  { %14 = vsyncpa [#allocation9], 0 }
   0x3   :  { %15 = vsyncpa [#allocation4], 0  ;;  %s1159_s24 = smov [#allocation5]  }
   0x4   :  { %s31_s25 = sshll.u32 %s1159_s24, 4  ;;  %s32_s25 = int_to_ptr.vmem [resolvable:$true] %s31_s25 }
   0x5   :  { %s1059_s26 = scalar_lea.vmem %s32_s25, 16384  ;;  %p1064_p1 = scmp.lt.s32.totalorder %s32_s25, %s32_s25 }
   0x6   :  { %p1060_p0 = scmp.ne.s32.totalorder %s32_s25, %s1059_s26  ;;  %p1065_p2 = scmp.lt.s32.totalorder %s1059_s26, %s1059_s26 }
   0x8   :  { %p1066_p3 = por %p1065_p2, %p1064_p1 }
   0xa   :  { %p1067_p4 = pnand %p1066_p3, %p1060_p0 }
   0xc   :  { %1070 = shalt.err (!%p1067_p4)
}
   0xd   :  { %s1160_s27 = smov 128   ;;  %s1161_s28 = smov 8  }
   0xe   :  { %37 = dma.hbm_to_vmem [thread:$0]  %s1260_s1, 16384, %s32_s25, [#allocation6], %s1160_s27, %s1160_s27, %s1161_s28  }
   0xf   :  { %s1162_s8 = smov [#allocation2]   ;;  %s1163_s10 = smov [#allocation7]  }
  0x10   :  { %s22_s9 = sshll.u32 %s1162_s8, 4  ;;  %s43_s11 = sshll.u32 %s1163_s10, 4  ;;  %s23_s9 = int_to_ptr.vmem [resolvable:$true] %s22_s9  ;;  %s44_s11 = int_to_ptr.vmem [resolvable:$true] %s43_s11 }
  0x11   :  { %s1079_s12 = scalar_lea.vmem %s23_s9, 256  ;;  %p1084_p6 = scmp.lt.s32.totalorder %s23_s9, %s23_s9 }
  0x12   :  { %p1080_p5 = scmp.ne.s32.totalorder %s23_s9, %s1079_s12  ;;  %p1085_p7 = scmp.lt.s32.totalorder %s1079_s12, %s1079_s12 }
  0x14   :  { %p1086_p8 = por %p1085_p7, %p1084_p6 }
  0x16   :  { %p1087_p9 = pnand %p1086_p8, %p1080_p5 }
  0x18   :  { %1090 = shalt.err (!%p1087_p9)
}
  0x19   :  { %25 = dma.hbm_to_vmem [thread:$0]  %s1259_s0, 256, %s23_s9, [#allocation3]  }
  0x1a   :  { %s1099_s15 = scalar_lea.vmem %s44_s11, 1024  ;;  %p1104_p11 = scmp.lt.s32.totalorder %s44_s11, %s44_s11 }
  0x1b   :  { %p1100_p10 = scmp.ne.s32.totalorder %s44_s11, %s1099_s15  ;;  %p1105_p12 = scmp.lt.s32.totalorder %s1099_s15, %s1099_s15 }
  0x1d   :  { %p1106_p13 = por %p1105_p12, %p1104_p11 }
  0x1f   :  { %p1107_p0 = pnand %p1106_p13, %p1100_p10 }
  0x21   :  { %1110 = shalt.err (!%p1107_p0)
}
  0x22   :  { %s1164_s1 = smov 64   ;;  %s1165_s16 = smov 4  }
  0x23   :  { %49 = dma.hbm_to_vmem [thread:$0]  %s1261_s2, 1024, %s44_s11, [#allocation6], %s1164_s1, %s1164_s1, %s1165_s16  }
  0x24   :  { %s1166_s19 = smov [#allocation8]  }
  0x25   :  { %s55_s20 = sshll.u32 %s1166_s19, 4  ;;  %s56_s20 = int_to_ptr.vmem [resolvable:$true] %s55_s20 }
  0x26   :  { %s1119_s21 = scalar_lea.vmem %s56_s20, 1024  ;;  %p1124_p2 = scmp.lt.s32.totalorder %s56_s20, %s56_s20 }
  0x27   :  { %p1120_p1 = scmp.ne.s32.totalorder %s56_s20, %s1119_s21  ;;  %p1125_p3 = scmp.lt.s32.totalorder %s1119_s21, %s1119_s21 }
  0x29   :  { %p1126_p4 = por %p1125_p3, %p1124_p2 }
  0x2b   :  { %p1127_p5 = pnand %p1126_p4, %p1120_p1 }
  0x2d   :  { %1130 = shalt.err (!%p1127_p5)
}
  0x2e   :  { %61 = dma.hbm_to_vmem [thread:$0]  %s1262_s3, 1024, %s56_s20, [#allocation9], %s1164_s1, %s1164_s1, %s1165_s16  }
  0x2f   :  { %1151 = dma.done.wait [#allocation3], 256  }
  0x30   :  { %1152 = vsyncadd [#allocation3], 4294967040 }
  0x31   :  { %1153 = dma.done.wait [#allocation6], 17408  }
  0x32   :  { %1154 = vsyncadd [#allocation6], 4294949888 }
  0x33   :  { %1155 = dma.done.wait [#allocation9], 1024  }
  0x34   :  { %1156 = vsyncadd [#allocation9], 4294966272  ;;  %v114_v0 = vld [vmem:[#allocation5 + $0xf8] sm:$0xff]  ;;  %v113_v4 = vld [vmem:[#allocation5 + $0xf0] sm:$0xff]  ;;  %v1167_v30 = vmov 1983009808   ;;  %v224_v32 = vlaneseq }
  0x35   :  { %v146_v1 = vld [vmem:[#allocation5 + $0x1f8] sm:$0xff]  ;;  %819 = vmatprep.subr.mxu0 %v114_v0  ;;  %v145_v5 = vld [vmem:[#allocation5 + $0x1f0] sm:$0xff]  ;;  %v112_v8 = vld [vmem:[#allocation5 + $0xe8] sm:$0xff]  ;;  %v222_v31 = vunpack.c.l.s4 %v1167_v30  ;;  %vm1169_vm0 = vmmov 0  }
  0x36   :  { %v98_v2 = vld [vmem:[#allocation5 + $0x78] sm:$0xff]  ;;  %854 = vmatprep.subr.mxu1 %v146_v1  ;;  %v97_v6 = vld [vmem:[#allocation5 + $0x70] sm:$0xff]  ;;  %v144_v9 = vld [vmem:[#allocation5 + $0x1e8] sm:$0xff]  ;;  %v225_v42 = vshrl.u32 %v224_v32, 7 }
  0x37   :  { %v130_v3 = vld [vmem:[#allocation5 + $0x178] sm:$0xff]  ;;  %820 = vmatpush3.msra.mxu0 %v98_v2  ;;  %v129_v7 = vld [vmem:[#allocation5 + $0x170] sm:$0xff]  ;;  %v96_v10 = vld [vmem:[#allocation5 + $0x68] sm:$0xff]  ;;  %v223_v41 = vunpack.c.0.s8 %v222_v31 }
  0x38   :  { %855 = vmatpush3.msra.mxu1 %v130_v3  ;;  %821 = vmatprep.subr.mxu0 %v113_v4  ;;  %v128_v11 = vld [vmem:[#allocation5 + $0x168] sm:$0xff]  ;;  %v111_v12 = vld [vmem:[#allocation5 + $0xe0] sm:$0xff]  ;;  %v110_v16 = vld [vmem:[#allocation5 + $0xd8] sm:$0xff] }
  0x39   :  { %856 = vmatprep.subr.mxu1 %v145_v5  ;;  %822 = vmatpush3.msra.mxu0 %v97_v6  ;;  %v143_v13 = vld [vmem:[#allocation5 + $0x1e0] sm:$0xff]  ;;  %v142_v17 = vld [vmem:[#allocation5 + $0x1d8] sm:$0xff]  ;;  %v109_v20 = vld [vmem:[#allocation5 + $0xd0] sm:$0xff]  ;;  %v1223_v51 = vsub.s32 %v223_v41, %v225_v42 }
  0x3a   :  { %857 = vmatpush3.msra.mxu1 %v129_v7  ;;  %823 = vmatprep.subr.mxu0 %v112_v8  ;;  %v95_v14 = vld [vmem:[#allocation5 + $0x60] sm:$0xff]  ;;  %v94_v18 = vld [vmem:[#allocation5 + $0x58] sm:$0xff]  ;;  %v141_v21 = vld [vmem:[#allocation5 + $0x1d0] sm:$0xff] }
  0x3b   :  { %858 = vmatprep.subr.mxu1 %v144_v9  ;;  %v127_v15 = vld [vmem:[#allocation5 + $0x160] sm:$0xff]  ;;  %824 = vmatpush3.msra.mxu0 %v96_v10  ;;  %v126_v19 = vld [vmem:[#allocation5 + $0x158] sm:$0xff]  ;;  %v93_v22 = vld [vmem:[#allocation5 + $0x50] sm:$0xff] }
  0x3c   :  { %859 = vmatpush3.msra.mxu1 %v128_v11  ;;  %825 = vmatprep.subr.mxu0 %v111_v12  ;;  %v125_v23 = vld [vmem:[#allocation5 + $0x150] sm:$0xff]  ;;  %v108_v24 = vld [vmem:[#allocation5 + $0xc8] sm:$0xff]  ;;  %v107_v28 = vld [vmem:[#allocation5 + $0xc0] sm:$0xff] }
  0x3d   :  { %860 = vmatprep.subr.mxu1 %v143_v13  ;;  %826 = vmatpush3.msra.mxu0 %v95_v14  ;;  %v140_v25 = vld [vmem:[#allocation5 + $0x1c8] sm:$0xff]  ;;  %v139_v29 = vld [vmem:[#allocation5 + $0x1c0] sm:$0xff]  ;;  %v106_v35 = vld [vmem:[#allocation5 + $0xb8] sm:$0xff] }
  0x3e   :  { %861 = vmatpush3.msra.mxu1 %v127_v15  ;;  %827 = vmatprep.subr.mxu0 %v110_v16  ;;  %v92_v26 = vld [vmem:[#allocation5 + $0x48] sm:$0xff]  ;;  %v91_v33 = vld [vmem:[#allocation5 + $0x40] sm:$0xff]  ;;  %v138_v36 = vld [vmem:[#allocation5 + $0x1b8] sm:$0xff] }
  0x3f   :  { %862 = vmatprep.subr.mxu1 %v142_v17  ;;  %828 = vmatpush3.msra.mxu0 %v94_v18  ;;  %v124_v27 = vld [vmem:[#allocation5 + $0x148] sm:$0xff]  ;;  %v123_v34 = vld [vmem:[#allocation5 + $0x140] sm:$0xff]  ;;  %v90_v37 = vld [vmem:[#allocation5 + $0x38] sm:$0xff] }
  0x40   :  { %863 = vmatpush3.msra.mxu1 %v126_v19  ;;  %829 = vmatprep.subr.mxu0 %v109_v20  ;;  %v122_v38 = vld [vmem:[#allocation5 + $0x138] sm:$0xff]  ;;  %v105_v39 = vld [vmem:[#allocation5 + $0xb0] sm:$0xff]  ;;  %v104_v45 = vld [vmem:[#allocation5 + $0xa8] sm:$0xff] }
  0x41   :  { %864 = vmatprep.subr.mxu1 %v141_v21  ;;  %830 = vmatpush3.msra.mxu0 %v93_v22  ;;  %v137_v40 = vld [vmem:[#allocation5 + $0x1b0] sm:$0xff]  ;;  %v136_v46 = vld [vmem:[#allocation5 + $0x1a8] sm:$0xff]  ;;  %v103_v49 = vld [vmem:[#allocation5 + $0xa0] sm:$0xff] }
  0x42   :  { %865 = vmatpush3.msra.mxu1 %v125_v23  ;;  %831 = vmatprep.subr.mxu0 %v108_v24  ;;  %v89_v43 = vld [vmem:[#allocation5 + $0x30] sm:$0xff]  ;;  %v88_v47 = vld [vmem:[#allocation5 + $0x28] sm:$0xff]  ;;  %v135_v50 = vld [vmem:[#allocation5 + $0x1a0] sm:$0xff] }
  0x43   :  { %866 = vmatprep.subr.mxu1 %v140_v25  ;;  %832 = vmatpush3.msra.mxu0 %v92_v26  ;;  %v121_v44 = vld [vmem:[#allocation5 + $0x130] sm:$0xff]  ;;  %v120_v48 = vld [vmem:[#allocation5 + $0x128] sm:$0xff]  ;;  %v87_v52 = vld [vmem:[#allocation5 + $0x20] sm:$0xff] }
  0x44   :  { %867 = vmatpush3.msra.mxu1 %v124_v27  ;;  %833 = vmatprep.subr.mxu0 %v107_v28  ;;  %v119_v53 = vld [vmem:[#allocation5 + $0x120] sm:$0xff]  ;;  %v81_v54 = vld [vmem:[#allocation2] sm:$0xff]  ;;  %v102_v55 = vld [vmem:[#allocation5 + $0x98] sm:$0xff] }
  0x45   :  { %868 = vmatprep.subr.mxu1 %v139_v29  ;;  %834 = vmatpush3.msra.mxu0 %v91_v33  ;;  %v134_v56 = vld [vmem:[#allocation5 + $0x198] sm:$0xff]  ;;  %v220_v57 = vcombine.high %v81_v54, %v81_v54  ;;  %v101_v60 = vld [vmem:[#allocation5 + $0x90] sm:$0xff]  ;;  %v227_v62 = vrot.slane %v81_v54, %v1223_v51  ;;  %v100_v1 = vld [vmem:[#allocation5 + $0x88] sm:$0xff] }
  0x46   :  { %869 = vmatpush3.msra.mxu1 %v123_v34  ;;  %835 = vmatprep.subr.mxu0 %v106_v35  ;;  %v86_v58 = vld [vmem:[#allocation5 + $0x18] sm:$0xff]  ;;  %v133_v61 = vld [vmem:[#allocation5 + $0x190] sm:$0xff]  ;;  %v132_v2 = vld [vmem:[#allocation5 + $0x188] sm:$0xff] }
  0x47   :  { %870 = vmatprep.subr.mxu1 %v138_v36  ;;  %836 = vmatpush3.msra.mxu0 %v90_v37  ;;  %v118_v59 = vld [vmem:[#allocation5 + $0x118] sm:$0xff]  ;;  %v85_v63 = vld [vmem:[#allocation5 + $0x10] sm:$0xff]  ;;  %v234_v3 = vrot.slane %v220_v57, %v1223_v51  ;;  %v84_v4 = vld [vmem:[#allocation5 + $0x8] sm:$0xff]  ;;  %v235_v8 = vcombine.high %v227_v62, %v227_v62 }
  0x48   :  { %871 = vmatpush3.msra.mxu1 %v122_v38  ;;  %837 = vmatprep.subr.mxu0 %v105_v39  ;;  %v117_v0 = vld [vmem:[#allocation5 + $0x110] sm:$0xff]  ;;  %v116_v5 = vld [vmem:[#allocation5 + $0x108] sm:$0xff]  ;;  %v99_v6 = vld [vmem:[#allocation5 + $0x80] sm:$0xff] }
  0x49   :  { %872 = vmatprep.subr.mxu1 %v137_v40  ;;  %838 = vmatpush3.msra.mxu0 %v89_v43  ;;  %v131_v7 = vld [vmem:[#allocation5 + $0x180] sm:$0xff]  ;;  %v236_v11 = vcombine.high %v234_v3, %v234_v3  ;;  %v178_v12 = vld [vmem:[#allocation5 + $0x2f8] sm:$0xff]  ;;  %v177_v16 = vld [vmem:[#allocation5 + $0x2f0] sm:$0xff] }
  0x4a   :  { %873 = vmatpush3.msra.mxu1 %v121_v44  ;;  %839 = vmatprep.subr.mxu0 %v104_v45  ;;  %v83_v9 = vld [vmem:[#allocation5] sm:$0xff]  ;;  %v210_v13 = vld [vmem:[#allocation5 + $0x3f8] sm:$0xff]  ;;  %v209_v17 = vld [vmem:[#allocation5 + $0x3f0] sm:$0xff] }
  0x4b   :  { %874 = vmatprep.subr.mxu1 %v136_v46  ;;  %840 = vmatpush3.msra.mxu0 %v88_v47  ;;  %v115_v10 = vld [vmem:[#allocation5 + $0x100] sm:$0xff]  ;;  %v162_v14 = vld [vmem:[#allocation5 + $0x278] sm:$0xff]  ;;  %v161_v18 = vld [vmem:[#allocation5 + $0x270] sm:$0xff] }
  0x4c   :  { %875 = vmatpush3.msra.mxu1 %v120_v48  ;;  %841 = vmatprep.subr.mxu0 %v103_v49  ;;  %v194_v15 = vld [vmem:[#allocation5 + $0x378] sm:$0xff]  ;;  %v193_v19 = vld [vmem:[#allocation5 + $0x370] sm:$0xff]  ;;  %v176_v20 = vld [vmem:[#allocation5 + $0x2e8] sm:$0xff] }
  0x4d   :  { %876 = vmatprep.subr.mxu1 %v135_v50  ;;  %842 = vmatpush3.msra.mxu0 %v87_v52  ;;  %v208_v21 = vld [vmem:[#allocation5 + $0x3e8] sm:$0xff]  ;;  %v175_v24 = vld [vmem:[#allocation5 + $0x2e0] sm:$0xff]  ;;  %v174_v28 = vld [vmem:[#allocation5 + $0x2d8] sm:$0xff] }
  0x4e   :  { %877 = vmatpush3.msra.mxu1 %v119_v53  ;;  %843 = vmatprep.subr.mxu0 %v102_v55  ;;  %v160_v22 = vld [vmem:[#allocation5 + $0x268] sm:$0xff]  ;;  %v207_v25 = vld [vmem:[#allocation5 + $0x3e0] sm:$0xff]  ;;  %v206_v29 = vld [vmem:[#allocation5 + $0x3d8] sm:$0xff] }
  0x4f   :  { %878 = vmatprep.subr.mxu1 %v134_v56  ;;  %844 = vmatpush3.msra.mxu0 %v86_v58  ;;  %v192_v23 = vld [vmem:[#allocation5 + $0x368] sm:$0xff]  ;;  %v159_v26 = vld [vmem:[#allocation5 + $0x260] sm:$0xff]  ;;  %v158_v30 = vld [vmem:[#allocation5 + $0x258] sm:$0xff] }
  0x50   :  { %879 = vmatpush3.msra.mxu1 %v118_v59  ;;  %845 = vmatprep.subr.mxu0 %v101_v60  ;;  %v191_v27 = vld [vmem:[#allocation5 + $0x360] sm:$0xff]  ;;  %v190_v31 = vld [vmem:[#allocation5 + $0x358] sm:$0xff]  ;;  %v173_v32 = vld [vmem:[#allocation5 + $0x2d0] sm:$0xff] }
  0x51   :  { %880 = vmatprep.subr.mxu1 %v133_v61  ;;  %846 = vmatpush3.msra.mxu0 %v85_v63  ;;  %v205_v33 = vld [vmem:[#allocation5 + $0x3d0] sm:$0xff]  ;;  %v172_v36 = vld [vmem:[#allocation5 + $0x2c8] sm:$0xff]  ;;  %v171_v40 = vld [vmem:[#allocation5 + $0x2c0] sm:$0xff] }
  0x52   :  { %881 = vmatpush3.msra.mxu1 %v117_v0  ;;  %847 = vmatprep.subr.mxu0 %v100_v1  ;;  %v157_v34 = vld [vmem:[#allocation5 + $0x250] sm:$0xff]  ;;  %v204_v37 = vld [vmem:[#allocation5 + $0x3c8] sm:$0xff]  ;;  %v203_v41 = vld [vmem:[#allocation5 + $0x3c0] sm:$0xff] }
  0x53   :  { %882 = vmatprep.subr.mxu1 %v132_v2  ;;  %848 = vmatpush3.msra.mxu0 %v84_v4  ;;  %v189_v35 = vld [vmem:[#allocation5 + $0x350] sm:$0xff]  ;;  %v156_v38 = vld [vmem:[#allocation5 + $0x248] sm:$0xff]  ;;  %v155_v42 = vld [vmem:[#allocation5 + $0x240] sm:$0xff] }
  0x54   :  { %883 = vmatpush3.msra.mxu1 %v116_v5  ;;  %849 = vmatprep.subr.mxu0 %v99_v6  ;;  %v188_v39 = vld [vmem:[#allocation5 + $0x348] sm:$0xff]  ;;  %v187_v43 = vld [vmem:[#allocation5 + $0x340] sm:$0xff]  ;;  %v170_v44 = vld [vmem:[#allocation5 + $0x2b8] sm:$0xff] }
  0x55   :  { %884 = vmatprep.subr.mxu1 %v131_v7  ;;  %850 = vmatpush3.msra.mxu0 %v83_v9  ;;  %v202_v45 = vld [vmem:[#allocation5 + $0x3b8] sm:$0xff]  ;;  %v169_v48 = vld [vmem:[#allocation5 + $0x2b0] sm:$0xff]  ;;  %v168_v53 = vld [vmem:[#allocation5 + $0x2a8] sm:$0xff] }
  0x56   :  { %326 = vmatprep.mubr.f32.mxu0 %v235_v8  ;;  %885 = vmatpush3.msra.mxu1 %v115_v10  ;;  %v154_v46 = vld [vmem:[#allocation5 + $0x238] sm:$0xff]  ;;  %v201_v49 = vld [vmem:[#allocation5 + $0x3b0] sm:$0xff]  ;;  %v200_v54 = vld [vmem:[#allocation5 + $0x3a8] sm:$0xff] }
  0x57   :  { %327 = vmatmul.mubr.f32.vlgmr.msra.gmra.mxu0 %v227_v62  ;;  %396 = vmatprep.mubr.f32.mxu1 %v236_v11  ;;  %v186_v47 = vld [vmem:[#allocation5 + $0x338] sm:$0xff]  ;;  %v153_v50 = vld [vmem:[#allocation5 + $0x230] sm:$0xff]  ;;  %v152_v56 = vld [vmem:[#allocation5 + $0x228] sm:$0xff] }
  0x58   :  { %889 = vmatprep.subr.mxu0 %v178_v12  ;;  %924 = vmatprep.subr.mxu1 %v210_v13  ;;  %v185_v52 = vld [vmem:[#allocation5 + $0x330] sm:$0xff]  ;;  %v82_v55 = vld [vmem:[#allocation2 + $0x8] sm:$0xff]  ;;  %v184_v57 = vld [vmem:[#allocation5 + $0x328] sm:$0xff] }
  0x59   :  { %397 = vmatmul.mubr.f32.vlgmr.msra.gmra.mxu1 %v234_v3  ;;  %890 = vmatpush3.msra.mxu0 %v162_v14  ;;  %v167_v58 = vld [vmem:[#allocation5 + $0x2a0] sm:$0xff]  ;;  %v237_v62 = vcombine.high %v82_v55, %v82_v55  ;;  %v166_v63 = vld [vmem:[#allocation5 + $0x298] sm:$0xff]  ;;  %v165_v3 = vld [vmem:[#allocation5 + $0x290] sm:$0xff]  ;;  %v244_v5 = vrot.slane %v82_v55, %v1223_v51 }
  0x5a   :  { %925 = vmatpush3.msra.mxu1 %v194_v15  ;;  %891 = vmatprep.subr.mxu0 %v177_v16  ;;  %v199_v59 = vld [vmem:[#allocation5 + $0x3a0] sm:$0xff]  ;;  %v198_v0 = vld [vmem:[#allocation5 + $0x398] sm:$0xff]  ;;  %v197_v4 = vld [vmem:[#allocation5 + $0x390] sm:$0xff] }
  0x5b   :  { %926 = vmatprep.subr.mxu1 %v209_v17  ;;  %892 = vmatpush3.msra.mxu0 %v161_v18  ;;  %v151_v60 = vld [vmem:[#allocation5 + $0x220] sm:$0xff]  ;;  %v150_v1 = vld [vmem:[#allocation5 + $0x218] sm:$0xff]  ;;  %v149_v6 = vld [vmem:[#allocation5 + $0x210] sm:$0xff]  ;;  %v251_v8 = vrot.slane %v237_v62, %v1223_v51  ;;  %v252_v15 = vcombine.high %v244_v5, %v244_v5 }
  0x5c   :  { %927 = vmatpush3.msra.mxu1 %v193_v19  ;;  %893 = vmatprep.subr.mxu0 %v176_v20  ;;  %v183_v61 = vld [vmem:[#allocation5 + $0x320] sm:$0xff]  ;;  %v182_v2 = vld [vmem:[#allocation5 + $0x318] sm:$0xff]  ;;  %v181_v7 = vld [vmem:[#allocation5 + $0x310] sm:$0xff]  ;;  %v1168_v19 = vmov 0.0  }
  0x5d   :  { %928 = vmatprep.subr.mxu1 %v208_v21  ;;  %894 = vmatpush3.msra.mxu0 %v160_v22  ;;  %v164_v9 = vld [vmem:[#allocation5 + $0x288] sm:$0xff]  ;;  %v163_v13 = vld [vmem:[#allocation5 + $0x280] sm:$0xff]  ;;  %v253_v17 = vcombine.high %v251_v8, %v251_v8  ;;  %v1031_v18 = vld [vmem:[#allocation7 + $0x38] sm:$0xff]  }
  0x5e   :  { %929 = vmatpush3.msra.mxu1 %v192_v23  ;;  %895 = vmatprep.subr.mxu0 %v175_v24  ;;  %v196_v10 = vld [vmem:[#allocation5 + $0x388] sm:$0xff]  ;;  %v195_v14 = vld [vmem:[#allocation5 + $0x380] sm:$0xff]  ;;  %v1032_v20 = vld [vmem:[#allocation7 + $0x30] sm:$0xff]  }
  0x5f   :  { %930 = vmatprep.subr.mxu1 %v207_v25  ;;  %896 = vmatpush3.msra.mxu0 %v159_v26  ;;  %v148_v11 = vld [vmem:[#allocation5 + $0x208] sm:$0xff]  ;;  %v147_v16 = vld [vmem:[#allocation5 + $0x200] sm:$0xff]  ;;  %v1035_v23 = vld [vmem:[#allocation7 + $0x18] sm:$0xff]  }
  0x60   :  { %931 = vmatpush3.msra.mxu1 %v191_v27  ;;  %897 = vmatprep.subr.mxu0 %v174_v28  ;;  %v180_v12 = vld [vmem:[#allocation5 + $0x308] sm:$0xff]  ;;  %v179_v51 = vld [vmem:[#allocation5 + $0x300] sm:$0xff]  ;;  %v1036_v24 = vld [vmem:[#allocation7 + $0x10] sm:$0xff]  }
  0x61   :  { %932 = vmatprep.subr.mxu1 %v206_v29  ;;  %898 = vmatpush3.msra.mxu0 %v158_v30  ;;  %v1033_v21 = vld [vmem:[#allocation7 + $0x28] sm:$0xff]   ;;  %v1034_v22 = vld [vmem:[#allocation7 + $0x20] sm:$0xff]   ;;  %v1039_v27 = vld [vmem:[#allocation8 + $0x38] sm:$0xff]  }
  0x62   :  { %933 = vmatpush3.msra.mxu1 %v190_v31  ;;  %899 = vmatprep.subr.mxu0 %v173_v32  ;;  %v1037_v25 = vld [vmem:[#allocation7 + $0x8] sm:$0xff]   ;;  %v1038_v26 = vld [vmem:[#allocation7] sm:$0xff]   ;;  %v1040_v28 = vld [vmem:[#allocation8 + $0x30] sm:$0xff]  }
  0x63   :  { %934 = vmatprep.subr.mxu1 %v205_v33  ;;  %900 = vmatpush3.msra.mxu0 %v157_v34  ;;  %v1041_v29 = vld [vmem:[#allocation8 + $0x28] sm:$0xff]   ;;  %v1042_v30 = vld [vmem:[#allocation8 + $0x20] sm:$0xff]   ;;  %v1043_v31 = vld [vmem:[#allocation8 + $0x18] sm:$0xff]  }
  0x64   :  { %935 = vmatpush3.msra.mxu1 %v189_v35  ;;  %901 = vmatprep.subr.mxu0 %v172_v36  ;;  %v1044_v32 = vld [vmem:[#allocation8 + $0x10] sm:$0xff]  }
  0x65   :  { %936 = vmatprep.subr.mxu1 %v204_v37  ;;  %902 = vmatpush3.msra.mxu0 %v156_v38  ;;  %v800_v37 = vld [vmem:[%s1263_s4] ss:$0 sm:$0xff] }
  0x66   :  { %937 = vmatpush3.msra.mxu1 %v188_v39  ;;  %903 = vmatprep.subr.mxu0 %v171_v40  ;;  %v801_v55 = vld [vmem:[%s1264_s5] ss:$0 sm:$0xff]  ;;  %s1170_s5 = smov [#allocation10]  }
  0x67   :  { %938 = vmatprep.subr.mxu1 %v203_v41  ;;  %904 = vmatpush3.msra.mxu0 %v155_v42  ;;  %s789_s26 = sshll.u32 %s1170_s5, 4  ;;  %s790_s26 = int_to_ptr.vmem [resolvable:$true] %s789_s26 }
  0x68   :  { %939 = vmatpush3.msra.mxu1 %v187_v43  ;;  %905 = vmatprep.subr.mxu0 %v170_v44  ;;  %p1136_p7 = scmp.lt.s32.totalorder %s790_s26, %s790_s26 }
  0x69   :  { %940 = vmatprep.subr.mxu1 %v202_v45  ;;  %906 = vmatpush3.msra.mxu0 %v154_v46 }
  0x6a   :  { %941 = vmatpush3.msra.mxu1 %v186_v47  ;;  %907 = vmatprep.subr.mxu0 %v169_v48 }
  0x6b   :  { %942 = vmatprep.subr.mxu1 %v201_v49  ;;  %908 = vmatpush3.msra.mxu0 %v153_v50 }
  0x6c   :  { %943 = vmatpush3.msra.mxu1 %v185_v52  ;;  %909 = vmatprep.subr.mxu0 %v168_v53  ;;  %v1045_v53 = vld [vmem:[#allocation8 + $0x8] sm:$0xff]  }
  0x6d   :  { %944 = vmatprep.subr.mxu1 %v200_v54  ;;  %910 = vmatpush3.msra.mxu0 %v152_v56  ;;  %v1046_v54 = vld [vmem:[#allocation8] sm:$0xff]  }
  0x6e   :  { %945 = vmatpush3.msra.mxu1 %v184_v57  ;;  %911 = vmatprep.subr.mxu0 %v167_v58 }
  0x6f   :  { %946 = vmatprep.subr.mxu1 %v199_v59  ;;  %912 = vmatpush3.msra.mxu0 %v151_v60 }
  0x70   :  { %947 = vmatpush3.msra.mxu1 %v183_v61  ;;  %913 = vmatprep.subr.mxu0 %v166_v63  ;;  %v810_v63 = vld [vmem:[%s1265_s6] ss:$0 sm:$0xff]  ;;  %s1131_s6 = scalar_lea.vmem %s790_s26, 32 }
  0x71   :  { %948 = vmatprep.subr.mxu1 %v198_v0  ;;  %914 = vmatpush3.msra.mxu0 %v150_v1  ;;  %p1132_p6 = scmp.ne.s32.totalorder %s790_s26, %s1131_s6  ;;  %p1137_p8 = scmp.lt.s32.totalorder %s1131_s6, %s1131_s6 }
  0x72   :  { %949 = vmatpush3.msra.mxu1 %v182_v2  ;;  %915 = vmatprep.subr.mxu0 %v165_v3 }
  0x73   :  { %950 = vmatprep.subr.mxu1 %v197_v4  ;;  %916 = vmatpush3.msra.mxu0 %v149_v6  ;;  %p1138_p9 = por %p1137_p8, %p1136_p7 }
  0x74   :  { %951 = vmatpush3.msra.mxu1 %v181_v7  ;;  %917 = vmatprep.subr.mxu0 %v164_v9 }
  0x75   :  { %952 = vmatprep.subr.mxu1 %v196_v10  ;;  %918 = vmatpush3.msra.mxu0 %v148_v11  ;;  %p1139_p10 = pnand %p1138_p9, %p1132_p6 }
  0x76   :  { %953 = vmatpush3.msra.mxu1 %v180_v12  ;;  %919 = vmatprep.subr.mxu0 %v163_v13 }
  0x77   :  { %954 = vmatprep.subr.mxu1 %v195_v14  ;;  %920 = vmatpush3.msra.mxu0 %v147_v16 }
  0x78   :  { %466 = vmatprep.mubr.f32.mxu0 %v252_v15  ;;  %955 = vmatpush3.msra.mxu1 %v179_v51 }
  0x79   :  { %536 = vmatprep.mubr.f32.mxu1 %v253_v17  ;;  %467 = vmatmul.mubr.f32.vlgmr.msra.gmra.mxu0 %v244_v5 }
  0x7a   :  { %537 = vmatmul.mubr.f32.vlgmr.msra.gmra.mxu1 %v251_v8  ;;  %977 = vmatprep.subr.bf16.mxu0 %v1168_v19 }
  0x7b   :  { %997 = vmatprep.subr.bf16.mxu1 %v1168_v19  ;;  %978 = vmatpush3.bf16.msra.mxu0 %v1031_v18 }
  0x7c   :  { %979 = vmatprep.subr.bf16.mxu0 %v1168_v19  ;;  %993 = vmatprep.mubr.msk.bf16.mxu0 %vm1169_vm0, %v1168_v19 }
  0x7d   :  { %1013 = vmatprep.mubr.msk.bf16.mxu1 %vm1169_vm0, %v1168_v19  ;;  %998 = vmatpush3.bf16.msra.mxu1 %v1039_v27 }
  0x7e   :  { %999 = vmatprep.subr.bf16.mxu1 %v1168_v19 }
  0x7f   :  { %980 = vmatpush3.bf16.msra.mxu0 %v1032_v20 }
  0x80   :  { %981 = vmatprep.subr.bf16.mxu0 %v1168_v19 }
  0x81   :  { %1000 = vmatpush3.bf16.msra.mxu1 %v1040_v28 }
  0x82   :  { %1001 = vmatprep.subr.bf16.mxu1 %v1168_v19 }
  0x83   :  { %982 = vmatpush3.bf16.msra.mxu0 %v1033_v21 }
  0x84   :  { %983 = vmatprep.subr.bf16.mxu0 %v1168_v19 }
  0x85   :  { %1002 = vmatpush3.bf16.msra.mxu1 %v1041_v29 }
  0x86   :  { %1003 = vmatprep.subr.bf16.mxu1 %v1168_v19 }
  0x87   :  { %984 = vmatpush3.bf16.msra.mxu0 %v1034_v22 }
  0x88   :  { %985 = vmatprep.subr.bf16.mxu0 %v1168_v19 }
  0x89   :  { %1004 = vmatpush3.bf16.msra.mxu1 %v1042_v30 }
  0x8a   :  { %1005 = vmatprep.subr.bf16.mxu1 %v1168_v19 }
  0x8b   :  { %986 = vmatpush3.bf16.msra.mxu0 %v1035_v23 }
  0x8c   :  { %987 = vmatprep.subr.bf16.mxu0 %v1168_v19 }
  0x8d   :  { %1006 = vmatpush3.bf16.msra.mxu1 %v1043_v31 }
  0x8e   :  { %1007 = vmatprep.subr.bf16.mxu1 %v1168_v19 }
  0x8f   :  { %988 = vmatpush3.bf16.msra.mxu0 %v1036_v24 }
  0x90   :  { %989 = vmatprep.subr.bf16.mxu0 %v1168_v19 }
  0x91   :  { %1008 = vmatpush3.bf16.msra.mxu1 %v1044_v32 }
  0x92   :  { %1009 = vmatprep.subr.bf16.mxu1 %v1168_v19 }
  0x93   :  { %990 = vmatpush3.bf16.msra.mxu0 %v1037_v25 }
  0x94   :  { %991 = vmatprep.subr.bf16.mxu0 %v1168_v19 }
  0x95   :  { %1010 = vmatpush3.bf16.msra.mxu1 %v1045_v53 }
  0x96   :  { %1011 = vmatprep.subr.bf16.mxu1 %v1168_v19 }
  0x97   :  { %992 = vmatpush3.bf16.msra.mxu0 %v1038_v26 }
  0x99   :  { %1012 = vmatpush3.bf16.msra.mxu1 %v1046_v54 }
 0x117   :  { %v851_v33 = vpop.f32.mrf.mxu0 }
 0x119   :  { %v886_v34 = vpop.f32.mrf.mxu1  ;;  %v852_v35 = vpop.f32.mrf.mxu0 }
 0x11a   :  { %v853_v36 = vadd.f32 %v852_v35, %v851_v33 }
 0x11b   :  { %v887_v38 = vpop.f32.mrf.mxu1 }
 0x11c   :  { %v329_v39 = vadd.f32 %v853_v36, %v800_v37  ;;  %v888_v40 = vadd.f32 %v887_v38, %v886_v34 }
 0x11e   :  { %v399_v45 = vadd.f32 %v888_v40, %v329_v39 }
 0x139   :  { %v921_v41 = vpop.f32.mrf.mxu0 }
 0x13a   :  { %v956_v42 = vpop.f32.mrf.mxu1 }
 0x13b   :  { %v922_v43 = vpop.f32.mrf.mxu0 }
 0x13c   :  { %v957_v44 = vpop.f32.mrf.mxu1  ;;  %v923_v46 = vadd.f32 %v922_v43, %v921_v41 }
 0x13d   :  { %v958_v48 = vadd.f32 %v957_v44, %v956_v42 }
 0x13e   :  { %v469_v47 = vadd.f32 %v923_v46, %v399_v45 }
 0x140   :  { %v539_v49 = vadd.f32 %v958_v48, %v469_v47 }
 0x142   :  { %v542_v50 = vmax.f32 %v539_v49, 0.0 }
 0x144   :  { %v543_v52 = vpack.c.bf16 %v542_v50, %v542_v50 }
 0x146   :  { %994 = vmatmul.mubr.bf16.vlgmr.msra.gmra.mxu0 %v543_v52 }
 0x206   :  { %v649_v56 = vpop.f32.mrf.mxu0 }
 0x207   :  { %v650_v57 = vadd.f32 %v801_v55, %v649_v56 }
 0x208   :  { %v995_v58 = vpop.f32.mrf.mxu0 }
 0x209   :  { %v655_v59 = vmax.f32 %v650_v57, 0.0 }
 0x20a   :  { %v652_v60 = vpop.f32.mrf.mxu0 }
 0x20b   :  { %v656_v61 = vpack.c.bf16 %v655_v59, %v655_v59 }
 0x20c   :  { %v996_v62 = vpop.f32.mrf.mxu0 }
 0x20d   :  { %1014 = vmatmul.mubr.bf16.vlgmr.msra.gmra.mxu1 %v656_v61 }
 0x2cd   :  { %v762_v0 = vpop.f32.mrf.mxu1 }
 0x2ce   :  { %v763_v1 = vadd.f32 %v810_v63, %v762_v0 }
 0x2cf   :  { %v1015_v2 = vpop.f32.mrf.mxu1 }
 0x2d0   :  { %v769_v3 = vmin.f32 %v763_v1, 20.0  ;;  %vm768_vm2 = vcmp.gt.f32.partialorder %v763_v1, 20.0 }
 0x2d1   :  { %v765_v4 = vpop.f32.mrf.mxu1 }
 0x2d2   :  { %v770_v5 = vmul.f32 1.442695, %v769_v3 }
 0x2d3   :  { %v1016_v6 = vpop.f32.mrf.mxu1 }
 0x2d4   :  { %1047 = vpow2.f32 %v770_v5 }
 0x2e1   :  { %v1048_v7 = vpop.eup %1047 }
 0x2e2   :  { %v772_v8 = vadd.f32 1.0, %v1048_v7  ;;  %v775_v9 = vmul.f32 -0.5, %v1048_v7  ;;  %v778_v11 = vand.u32 2147483647, %v1048_v7 }
 0x2e4   :  { %1049 = vlog2.f32 %v772_v8  ;;  %v776_v10 = vadd.f32 1.0, %v775_v9  ;;  %vm779_vm1 = vcmp.lt.f32.partialorder %v778_v11, 0.0004427343 }
 0x2e6   :  { %v777_v14 = vmul.f32 %v1048_v7, %v776_v10 }
 0x2f1   :  { %v1050_v12 = vpop.eup %1049 }
 0x2f2   :  { %v774_v13 = vmul.f32 0.6931472, %v1050_v12 }
 0x2f4   :  { %v780_v15 = vsel %vm779_vm1, %v777_v14, %v774_v13 }
 0x2f5   :  { %v781_v16 = vsel %vm768_vm2, %v763_v1, %v780_v15 }
 0x2f6   :  { %782 = vst [vmem:[#allocation10] sm:$0x3] %v781_v16 }
 0x2f7   :  { %1142 = shalt.err (!%p1139_p10)
}
 0x2f8   :  { %792 = dma.vmem_to_hbm [thread:$0]  %s790_s26, 32, %s1266_s7, [#allocation4]  }
 0x2f9   :  { %1157 = dma.done.wait [#allocation4], 32  }
 0x2fa   :  { %1158 = vsyncadd [#allocation4], 4294967264 }
 0x2fb   :  { %796 = vsyncpa [#allocation3], 1 }
 0x2fc   :  { %797 = vsyncpa [#allocation6], 1 }
 0x2fd   :  { %798 = vsyncpa [#allocation9], 1 }
 0x2fe   :  { %799 = vsyncpa [#allocation4], 1 }

</bundles_post_ra>
